<compile_context>
chip_gen: v7x
topology: tpu7x:2x2x1
jax: 0.10.0
libtpu: 0.0.40
codegen_flags: <defaults>
</compile_context>

<pallas_src>
import math
from functools import partial

import jax
import jax.numpy as jnp
from jax.experimental import pallas as pl
from jax.experimental.pallas import tpu as pltpu

DT = 0.001
V_LEAK = 0.0          # folded into the kernels as (x - v)
V_RESET = 0.0         # folded into the kernels as where(spike, 0, v_dec)
V_TH = 0.1            # baked into the LIF kernels as a Python constant

LANE = 1024                          # lane-dense last dim (8 full vregs / row)
MAX_TILE_ROWS = 512                  # (512, 1024) f32 = 2 MiB per array tile
VMEM_LIMIT_BYTES = 32 * 1024 * 1024  # raise v5e's 16 MiB scoped default


# ------------------------------ Pallas kernels ------------------------------
# Purely elementwise on a lane-dense (rows, LANE) view.  Inputs/outputs stream
# in the caller's dtype; math is done in f32.

def _lif_kernel(a_ref, x_ref, v_ref, z_ref, vout_ref):
    # a = dt * tau_mem_inv (folded on the host); v_leak = 0, v_reset = 0
    a = a_ref[0]
    x = x_ref[...].astype(jnp.float32)
    v = v_ref[...].astype(jnp.float32)
    v_dec = v + a * (x - v)
    spike = v_dec > V_TH
    z_ref[...] = jnp.where(spike, 1.0, 0.0).astype(z_ref.dtype)
    vout_ref[...] = jnp.where(spike, 0.0, v_dec).astype(vout_ref.dtype)


def _lif0_kernel(a_ref, x_ref, z_ref, vout_ref):
    # state=None fast path: v = v_leak = 0  =>  v_dec = a * x
    a = a_ref[0]
    v_dec = a * x_ref[...].astype(jnp.float32)
    spike = v_dec > V_TH
    z_ref[...] = jnp.where(spike, 1.0, 0.0).astype(z_ref.dtype)
    vout_ref[...] = jnp.where(spike, 0.0, v_dec).astype(vout_ref.dtype)


def _li_kernel(a_ref, x_ref, v_ref, o_ref, vout_ref):
    a = a_ref[0]
    x = x_ref[...].astype(jnp.float32)
    v = v_ref[...].astype(jnp.float32)
    v_new = v + a * (x - v)
    vout_ref[...] = v_new.astype(vout_ref.dtype)
    o_ref[...] = jnp.maximum(v_new, 0.0).astype(o_ref.dtype)   # LIBoxCell + ReLU


def _li0_kernel(a_ref, x_ref, o_ref, vout_ref):
    v_new = a_ref[0] * x_ref[...].astype(jnp.float32)
    vout_ref[...] = v_new.astype(vout_ref.dtype)
    o_ref[...] = jnp.maximum(v_new, 0.0).astype(o_ref.dtype)


# ------------------------------ host wrappers -------------------------------

def _round_up(x, m):
    return (x + m - 1) // m * m


def _sublane(dtype):
    # sub-32-bit dtypes pack along sublanes: min second-minor granularity grows
    return max(8, (8 * 4) // jnp.dtype(dtype).itemsize)


def _to_2d(arr, total, dtype):
    """Flatten to a lane-dense (rows, LANE) view, padding only to LANE (<=4 KiB)."""
    padded = _round_up(total, LANE)
    flat = arr.reshape(-1).astype(dtype)
    if padded != total:
        flat = jnp.pad(flat, (0, padded - total))
    return flat.reshape(padded // LANE, LANE)


def _from_2d(arr2d, total, shape):
    return arr2d.reshape(-1)[:total].reshape(shape)


def _tile_rows(rows, sub):
    if rows < 2 * sub:
        return rows                      # single block; block dim == full array dim
    # >= 2 grid steps so both v7x TensorCores stream the "parallel" axis
    half = _round_up(pl.cdiv(rows, 2), sub)
    return min(MAX_TILE_ROWS, half)


def _ew_call(kernel, scalars, tensors, out_dtypes):
    """Row-tiled elementwise pallas_call over lane-dense (rows, LANE) arrays."""
    rows, lane = tensors[0].shape
    sub = max(_sublane(t.dtype) for t in tensors)
    tm = _tile_rows(rows, sub)
    grid = (pl.cdiv(rows, tm),)          # partial trailing block is fine (elementwise)
    spec = pl.BlockSpec((tm, lane), lambda i: (i, 0))
    smem = pl.BlockSpec(memory_space=pltpu.SMEM)

    out_shapes = tuple(jax.ShapeDtypeStruct((rows, lane), d) for d in out_dtypes)
    out_specs = tuple(spec for _ in out_dtypes)
    if len(out_dtypes) == 1:
        out_shapes, out_specs = out_shapes[0], out_specs[0]

    return pl.pallas_call(
        kernel,
        out_shape=out_shapes,
        grid=grid,
        in_specs=[smem] * len(scalars) + [spec] * len(tensors),
        out_specs=out_specs,
        compiler_params=pltpu.CompilerParams(
            dimension_semantics=("parallel",),
            vmem_limit_bytes=VMEM_LIMIT_BYTES),
    )(*scalars, *tensors)


# jitted per-activation steps (pad/astype -> pallas_call -> slice/reshape fuse)

@jax.jit
def _relu_step(x):
    # XLA's fused elementwise relu already runs at the HBM roofline.
    return jnp.maximum(x, 0.0)


@jax.jit
def _lif0_step(x, a):
    shape, total = x.shape, math.prod(x.shape)
    x2d = _to_2d(x, total, x.dtype)
    z2d, v2d = _ew_call(_lif0_kernel, (a,), (x2d,), (x.dtype, x.dtype))
    return _from_2d(z2d, total, shape), _from_2d(v2d, total, shape)


@jax.jit
def _lif_step(x, v, a):
    shape, total = x.shape, math.prod(x.shape)
    x2d = _to_2d(x, total, x.dtype)
    vin = _to_2d(v, total, x.dtype)
    z2d, v2d = _ew_call(_lif_kernel, (a,), (x2d, vin), (x.dtype, x.dtype))
    return _from_2d(z2d, total, shape), _from_2d(v2d, total, shape)


@jax.jit
def _li0_step(x, a):
    shape, total = x.shape, math.prod(x.shape)
    x2d = _to_2d(x, total, x.dtype)
    o2d, v2d = _ew_call(_li0_kernel, (a,), (x2d,), (x.dtype, x.dtype))
    return _from_2d(o2d, total, shape), _from_2d(v2d, total, shape)


@jax.jit
def _li_step(x, v, a):
    shape, total = x.shape, math.prod(x.shape)
    x2d = _to_2d(x, total, x.dtype)
    vin = _to_2d(v, total, x.dtype)
    o2d, v2d = _ew_call(_li_kernel, (a,), (x2d, vin), (x.dtype, x.dtype))
    return _from_2d(o2d, total, shape), _from_2d(v2d, total, shape)


class TemporalRF:
    """JAX/Pallas equivalent of the PyTorch TemporalRF module (one timestep)."""

    def __init__(self, tau: float, activation: str):
        self.activation = activation.lower()
        if self.activation not in ("relu", "lif", "li"):
            raise ValueError(f"Unknown activation function: {activation}")
        if self.activation in ("lif", "li"):
            # trainable parameter in the PyTorch module; deterministic init here.
            self.tau_mem_inv = jnp.asarray(float(tau), dtype=jnp.float32)
            # fold dt * tau into one SMEM scalar once (not per call)
            self._a = (jnp.float32(DT) * self.tau_mem_inv).reshape(1)

    def __call__(self, x, state=None):
        if self.activation == "relu":
            return _relu_step(x), state
        if self.activation == "lif":
            if state is None:
                return _lif0_step(x, self._a)
            return _lif_step(x, state, self._a)
        # 'li' : LIBoxCell followed by ReLU
        if state is None:
            return _li0_step(x, self._a)
        return _li_step(x, state, self._a)


# ------------------------------ reference (JAX) ------------------------------

def _lif_ref(tau, x, v):
    a = jnp.float32(DT) * jnp.float32(tau)
    v_dec = v + a * (x - v)
    spike = v_dec > V_TH
    return (jnp.where(spike, 1.0, 0.0).astype(x.dtype),
            jnp.where(spike, 0.0, v_dec).astype(x.dtype))


def _li_ref(tau, x, v):
    a = jnp.float32(DT) * jnp.float32(tau)
    v_new = v + a * (x - v)
    return jnp.maximum(v_new, 0.0).astype(x.dtype), v_new.astype(x.dtype)


if __name__ == "__main__":
    key = jax.random.PRNGKey(0)
    B, C, H, W = 2, 4, 16, 16
    tau = 100.0

    k1, k2, k3, k4 = jax.random.split(key, 4)
    x0 = jax.random.normal(k1, (B, C, H, W), dtype=jnp.float32)
    x1 = jax.random.normal(k2, (B, C, H, W), dtype=jnp.float32)

    # LIF temporal RF, two timesteps (state carried across calls)
    rf_lif = TemporalRF(tau, "lif")
    z0, s0 = rf_lif(x0, None)
    z1, s1 = rf_lif(x1, s0)
    jax.block_until_ready((z0, s0, z1, s1))

    z0_ref, v0_ref = _lif_ref(tau, x0, jnp.zeros_like(x0))
    z1_ref, v1_ref = _lif_ref(tau, x1, v0_ref)
    assert z0.shape == x0.shape and s0.shape == x0.shape
    assert z0.dtype == x0.dtype and s0.dtype == x0.dtype
    assert jnp.allclose(z0, z0_ref, atol=1e-6) and jnp.allclose(s0, v0_ref, atol=1e-6)
    assert jnp.allclose(z1, z1_ref, atol=1e-6) and jnp.allclose(s1, v1_ref, atol=1e-6)

    # LI temporal RF (LIBoxCell + ReLU), two timesteps
    rf_li = TemporalRF(tau, "li")
    y0, t0 = rf_li(x0, None)
    y1, t1 = rf_li(x1, t0)
    jax.block_until_ready((y0, t0, y1, t1))
    y0_ref, t0_ref = _li_ref(tau, x0, jnp.zeros_like(x0))
    y1_ref, t1_ref = _li_ref(tau, x1, t0_ref)
    assert jnp.allclose(y0, y0_ref, atol=1e-6) and jnp.allclose(t0, t0_ref, atol=1e-6)
    assert jnp.allclose(y1, y1_ref, atol=1e-6) and jnp.allclose(t1, t1_ref, atol=1e-6)

    # ReLU variant
    rf_relu = TemporalRF(tau, "relu")
    r0, _ = rf_relu(x0, None)
    jax.block_until_ready(r0)
    assert jnp.allclose(r0, jnp.maximum(x0, 0.0), atol=1e-6)

    # small ragged shape (pad + slice-back path, single block)
    xr = jax.random.normal(k3, (3, 5, 7, 9), dtype=jnp.float32)
    zr, sr = rf_lif(xr, None)
    jax.block_until_ready((zr, sr))
    zr_ref, sr_ref = _lif_ref(tau, xr, jnp.zeros_like(xr))
    assert zr.shape == xr.shape
    assert jnp.allclose(zr, zr_ref, atol=1e-6) and jnp.allclose(sr, sr_ref, atol=1e-6)

    # larger ragged shape (>=2 grid steps + partial trailing block path)
    xb = jax.random.normal(k4, (5, 9, 48, 64), dtype=jnp.float32)   # 138240 elems -> 135 rows
    zb0, sb0 = rf_lif(xb, None)
    zb1, sb1 = rf_lif(xb * 0.5, sb0)
    jax.block_until_ready((zb0, sb0, zb1, sb1))
    zb0_ref, vb0_ref = _lif_ref(tau, xb, jnp.zeros_like(xb))
    zb1_ref, vb1_ref = _lif_ref(tau, xb * 0.5, vb0_ref)
    assert jnp.allclose(zb0, zb0_ref, atol=1e-6) and jnp.allclose(sb0, vb0_ref, atol=1e-6)
    assert jnp.allclose(zb1, zb1_ref, atol=1e-6) and jnp.allclose(sb1, vb1_ref, atol=1e-6)

    print("KERNEL_OK")
</pallas_src>

<mosaic_0001>
module attributes {stable_mosaic.version = 11 : i64} {
  func.func @_lif0_kernel(%arg0: i32, %arg1: memref<1xf32, #tpu.memory_space<smem>>, %arg2: memref<2x1024xf32, #tpu.memory_space<vmem>>, %arg3: memref<2x1024xf32, #tpu.memory_space<vmem>>, %arg4: memref<2x1024xf32, #tpu.memory_space<vmem>>) attributes {dimension_semantics = [#tpu.dimension_semantics<parallel>], iteration_bounds = array<i64: 1>, scalar_prefetch = 0 : i64, scratch_operands = 0 : i64, tpu.core_type = #tpu.core_type<tc>, window_params = [{transform_indices = @transform_0, window_bounds = array<i64: 1>}, {transform_indices = @transform_1, window_bounds = array<i64: 2, 1024>}, {transform_indices = @transform_2, window_bounds = array<i64: 2, 1024>}, {transform_indices = @transform_3, window_bounds = array<i64: 2, 1024>}]} {
    %c0 = arith.constant 0 : index
    %0 = memref.load %arg1[%c0] : memref<1xf32, #tpu.memory_space<smem>>
    %c0_0 = arith.constant 0 : index
    %c0_1 = arith.constant 0 : index
    %1 = vector.load %arg2[%c0_0, %c0_1] : memref<2x1024xf32, #tpu.memory_space<vmem>>, vector<2x1024xf32>
    %2 = vector.broadcast %0 : f32 to vector<2x1024xf32>
    %3 = arith.mulf %2, %1 : vector<2x1024xf32>
    %cst = arith.constant 1.000000e-01 : f32
    %4 = vector.broadcast %cst : f32 to vector<2x1024xf32>
    %5 = arith.cmpf ogt, %3, %4 : vector<2x1024xf32>
    %cst_2 = arith.constant 1.000000e+00 : f32
    %cst_3 = arith.constant 0.000000e+00 : f32
    %6 = vector.broadcast %cst_2 : f32 to vector<2x1024xf32>
    %7 = vector.broadcast %cst_3 : f32 to vector<2x1024xf32>
    %8 = arith.select %5, %6, %7 : vector<2x1024xi1>, vector<2x1024xf32>
    %c0_4 = arith.constant 0 : index
    %c0_5 = arith.constant 0 : index
    %9 = vector.load %arg3[%c0_4, %c0_5] : memref<2x1024xf32, #tpu.memory_space<vmem>>, vector<2x1024xf32>
    tpu.vector_store %arg3[%c0_4, %c0_5], %8 {strides = array<i32>} : memref<2x1024xf32, #tpu.memory_space<vmem>>, vector<2x1024xf32>,
    %cst_6 = arith.constant 0.000000e+00 : f32
    %10 = vector.broadcast %cst_6 : f32 to vector<2x1024xf32>
    %11 = arith.select %5, %10, %3 : vector<2x1024xi1>, vector<2x1024xf32>
    %c0_7 = arith.constant 0 : index
    %c0_8 = arith.constant 0 : index
    %12 = vector.load %arg4[%c0_7, %c0_8] : memref<2x1024xf32, #tpu.memory_space<vmem>>, vector<2x1024xf32>
    tpu.vector_store %arg4[%c0_7, %c0_8], %11 {strides = array<i32>} : memref<2x1024xf32, #tpu.memory_space<vmem>>, vector<2x1024xf32>,
    return
  }
  func.func @transform_0(%arg0: i32) -> i32 {
    %c0_i32 = arith.constant 0 : i32
    %c0_i32_0 = arith.constant 0 : i32
    return %c0_i32 : i32
  }
  func.func @transform_1(%arg0: i32) -> (i32, i32) {
    %c0_i32 = arith.constant 0 : i32
    %c0_i32_0 = arith.constant 0 : i32
    return %arg0, %c0_i32 : i32, i32
  }
  func.func @transform_2(%arg0: i32) -> (i32, i32) {
    %c0_i32 = arith.constant 0 : i32
    %c0_i32_0 = arith.constant 0 : i32
    return %arg0, %c0_i32 : i32, i32
  }
  func.func @transform_3(%arg0: i32) -> (i32, i32) {
    %c0_i32 = arith.constant 0 : i32
    %c0_i32_0 = arith.constant 0 : i32
    return %arg0, %c0_i32 : i32, i32
  }
}

</mosaic_0001>

<bundles_post_ra>
// kernel: _lif0_step.1
= control target key start
LH: loop header
LB: loop body
LE: loop exit
PB: predicated region body
PF: predicated region fallthrough
CT: control target
= control target key end

     0   :  { %v39_v5 = vmov 0.0   ;;  %s81_s0 = inlined_call_operand.<no memory space> [shape: f32[1], index: 0, kind: input, shape index: {}]   ;;  %s82_s1 = inlined_call_operand.vmem [shape: f32[2,1024], index: 1, kind: input, shape index: {}]   ;;  %s83_s2 = inlined_call_operand.vmem [shape: f32[2,1024], index: 2, kind: output, shape index: {0}]   ;;  %s84_s3 = inlined_call_operand.vmem [shape: f32[2,1024], index: 3, kind: output, shape index: {1}]  }
   0x1   :  { %v15_v0 = vld [vmem:[%s82_s1] sm:$0xff]  ;;  %v17_v1 = vstv %s81_s0  ;;  %v16_v2 = vld [vmem:[%s82_s1 + $0x8] sm:$0xff] }
   0x2   :  { %v18_v3 = vmul.f32 %v17_v1, %v15_v0  ;;  %v19_v4 = vmul.f32 %v17_v1, %v16_v2 }
   0x4   :  { %vm20_vm0 = vcmp.gt.f32.partialorder %v18_v3, 0.1  ;;  %vm21_vm1 = vcmp.gt.f32.partialorder %v19_v4, 0.1 }
   0x5   :  { %v22_v6 = vsel %vm20_vm0, 1.0, %v39_v5  ;;  %v23_v7 = vsel %vm21_vm1, 1.0, %v39_v5  ;;  %v26_v8 = vsel %vm20_vm0, 0.0, %v18_v3  ;;  %v27_v9 = vsel %vm21_vm1, 0.0, %v19_v4 }
   0x6   :  { %24 = vst [vmem:[%s83_s2] sm:$0xff] %v22_v6  ;;  %25 = vst [vmem:[%s83_s2 + $0x8] sm:$0xff] %v23_v7 }
   0x7   :  { %28 = vst [vmem:[%s84_s3] sm:$0xff] %v26_v8  ;;  %29 = vst [vmem:[%s84_s3 + $0x8] sm:$0xff] %v27_v9 }

</bundles_post_ra>
